<compile_context>
chip_gen: v7x
topology: tpu7x:2x2x1
jax: 0.10.0
libtpu: 0.0.40
codegen_flags: <defaults>
</compile_context>

<pallas_src>
import functools

import jax
import jax.numpy as jnp
from jax.experimental import pallas as pl
from jax.experimental.pallas import tpu as pltpu


def _round_up(x, m):
    return (x + m - 1) // m * m


def _choose_d_tile(d, kp):
    """Contraction tile (multiple of 128); streamed weight block kept <= ~4 MiB."""
    td_cap = max(128, min(2048, ((4 << 20) // (2 * kp)) // 128 * 128))
    if d <= td_cap:
        td = _round_up(d, 128)
    else:
        cands = [t for t in (2048, 1024, 512, 256, 128) if t <= td_cap]
        td = min(cands, key=lambda t: (_round_up(d, t), -t))
    d_pad = _round_up(d, td)
    return td, d_pad


def _choose_batch_tile(n, td, kp):
    """Batch tile: 16-aligned, VMEM-bounded, >=2 tiles when possible (megacore)."""
    n16 = _round_up(max(n, 1), 16)
    cap_x = ((4 << 20) // (4 * td)) // 16 * 16     # f32 x block <= 4 MiB
    cap_o = ((6 << 20) // (4 * kp)) // 16 * 16     # f32 logits block <= 6 MiB
    cap = max(16, min(512, cap_x, cap_o))
    if n16 <= 32:
        tn = min(n16, cap)
    else:
        tn = min(cap, _round_up(n16 // 2, 16))     # at least 2 batch tiles
    n_pad = _round_up(n, tn)
    return tn, n_pad


_COMPILER_PARAMS = pltpu.CompilerParams(
    dimension_semantics=("parallel", "arbitrary"),
    vmem_limit_bytes=32 * 1024 * 1024,
)


def _vanilla_train_kernel(x_ref, w_ref, b_ref, tgt_ref, logits_ref, loss_ref,
                          *, num_classes, batch_size, block_n, block_d,
                          last_step, w_resident):
    """Fused linear-student + cross-entropy.

    grid = (batch tiles [parallel], D tiles [arbitrary, reduction]).
      x:      (TN, TD)     f32 flattened-image tile (cast to bf16 in-kernel)
      w:      (D_pad, KP)  bf16 resident weight  OR  (TD, KP) streamed tile
      b:      (1, KP)      f32 bias (zero-padded classes)
      tgt:    (TN, 1)      int32 targets
      logits: (TN, KP)     f32 output block; doubles as the f32 accumulator
      loss:   (1, 1, 128)  f32 per-batch-tile CE sum (lane-dense broadcast)
    """
    kstep = pl.program_id(1)
    row0 = pl.program_id(0) * block_n      # hoisted out of pl.when (compile-safe)

    @pl.when(kstep == 0)
    def _():
        logits_ref[...] = jnp.zeros(logits_ref.shape, logits_ref.dtype)

    x = x_ref[...].astype(jnp.bfloat16)
    if w_resident:
        w = w_ref[pl.ds(kstep * block_d, block_d), :]
    else:
        w = w_ref[...]
    logits_ref[...] += jnp.dot(x, w, preferred_element_type=jnp.float32)

    @pl.when(kstep == last_step)
    def _():
        logits = logits_ref[...] + b_ref[...]                    # (TN, KP) f32
        logits_ref[...] = logits

        tn, kp = logits.shape
        col = jax.lax.broadcasted_iota(jnp.int32, (tn, kp), 1)
        valid_col = col < num_classes
        lm = jnp.where(valid_col, logits, jnp.float32(-1e30))    # mask padded classes

        m = jnp.max(lm, axis=-1, keepdims=True)                  # (TN, 1)
        lse = m + jnp.log(jnp.sum(jnp.exp(lm - m), axis=-1, keepdims=True))

        tgt = tgt_ref[...]                                       # (TN, 1) int32
        tmask = jnp.logical_and(col == tgt, valid_col)
        tgt_logit = jnp.sum(jnp.where(tmask, logits, 0.0),
                            axis=-1, keepdims=True)              # (TN, 1)

        row = row0 + jax.lax.broadcasted_iota(jnp.int32, (tn, 1), 0)
        per_ex = jnp.where(row < batch_size, lse - tgt_logit, 0.0)
        loss_ref[...] = jnp.full(loss_ref.shape, jnp.sum(per_ex), dtype=jnp.float32)


def _vanilla_test_kernel(x_ref, w_ref, b_ref, logits_ref,
                         *, block_d, last_step, w_resident):
    """Eval path: tiled linear layer only (accumulates into logits output block)."""
    kstep = pl.program_id(1)

    @pl.when(kstep == 0)
    def _():
        logits_ref[...] = jnp.zeros(logits_ref.shape, logits_ref.dtype)

    x = x_ref[...].astype(jnp.bfloat16)
    if w_resident:
        w = w_ref[pl.ds(kstep * block_d, block_d), :]
    else:
        w = w_ref[...]
    logits_ref[...] += jnp.dot(x, w, preferred_element_type=jnp.float32)

    @pl.when(kstep == last_step)
    def _():
        logits_ref[...] = logits_ref[...] + b_ref[...]


class VanillaPallas:
    """JAX/Pallas equivalent of mdistiller Vanilla with a linear student."""

    def __init__(self, in_features, num_classes, key):
        kw, kb = jax.random.split(key)
        self.in_features = in_features
        self.num_classes = num_classes
        # Learnable parameters (PyTorch nn.Linear shape convention).
        self.weight = (jax.random.normal(kw, (num_classes, in_features),
                                         jnp.float32) * 0.02)          # (K, D)
        self.bias = jax.random.normal(kb, (num_classes,), jnp.float32) * 0.01

        self._kp = _round_up(num_classes, 128)                  # lane-dense classes
        self._td, self._d_pad = _choose_d_tile(in_features, self._kp)
        self._grid_k = self._d_pad // self._td
        self._w_resident = (self._d_pad * self._kp * 2) <= (4 << 20)

        # Pre-transposed, zero-padded, bf16 weight (D_pad, KP); f32 padded bias.
        w_t = jnp.zeros((self._d_pad, self._kp), jnp.float32)
        w_t = w_t.at[:in_features, :num_classes].set(self.weight.T)
        self._w_t = w_t.astype(jnp.bfloat16)
        b = jnp.zeros((1, self._kp), jnp.float32)
        self._b = b.at[0, :num_classes].set(self.bias)

    # --- helpers -----------------------------------------------------------

    def get_learnable_parameters(self):
        return [self.weight, self.bias]

    def _w_spec(self):
        if self._w_resident:
            return pl.BlockSpec((self._d_pad, self._kp), lambda i, j: (0, 0))
        return pl.BlockSpec((self._td, self._kp), lambda i, j: (j, 0))

    def _prep_x(self, image, n, n_pad):
        d, d_pad = self.in_features, self._d_pad
        x = image.reshape(n, -1)                     # free metadata reshape
        if x.dtype != jnp.float32:
            x = x.astype(jnp.float32)
        if n_pad != n or d_pad != d:                 # pad only when needed
            x = jnp.pad(x, ((0, n_pad - n), (0, d_pad - d)))
        return x

    # --- forward paths -----------------------------------------------------

    @functools.partial(jax.jit, static_argnums=0)
    def forward_train(self, image, target):
        n = image.shape[0]
        d, k = self.in_features, self.num_classes
        td, d_pad, kp = self._td, self._d_pad, self._kp
        tn, n_pad = _choose_batch_tile(n, td, kp)
        grid = (n_pad // tn, d_pad // td)

        x = self._prep_x(image, n, n_pad)
        tgt = target.astype(jnp.int32)
        if n_pad != n:
            tgt = jnp.pad(tgt, (0, n_pad - n))
        tgt = tgt.reshape(n_pad, 1)

        kernel = functools.partial(
            _vanilla_train_kernel,
            num_classes=k, batch_size=n, block_n=tn, block_d=td,
            last_step=grid[1] - 1, w_resident=self._w_resident)

        logits_pad, loss_tiles = pl.pallas_call(
            kernel,
            out_shape=(
                jax.ShapeDtypeStruct((n_pad, kp), jnp.float32),
                jax.ShapeDtypeStruct((grid[0], 1, 128), jnp.float32),
            ),
            grid_spec=pltpu.PrefetchScalarGridSpec(
                num_scalar_prefetch=0,
                grid=grid,
                in_specs=[
                    pl.BlockSpec((tn, td), lambda i, j: (i, j)),       # x
                    self._w_spec(),                                    # weight
                    pl.BlockSpec((1, kp), lambda i, j: (0, 0)),        # bias
                    pl.BlockSpec((tn, 1), lambda i, j: (i, 0)),        # targets
                ],
                out_specs=[
                    pl.BlockSpec((tn, kp), lambda i, j: (i, 0)),       # logits/acc
                    pl.BlockSpec((1, 1, 128), lambda i, j: (i, 0, 0)),  # tile loss
                ],
            ),
            compiler_params=_COMPILER_PARAMS,
        )(x, self._w_t, self._b, tgt)

        logits = logits_pad[:n, :k]
        loss = jnp.sum(loss_tiles[:, 0, 0]) * (1.0 / n)   # mean over global batch
        return logits, {"ce": loss}

    @functools.partial(jax.jit, static_argnums=0)
    def forward_test(self, image):
        n = image.shape[0]
        d, k = self.in_features, self.num_classes
        td, d_pad, kp = self._td, self._d_pad, self._kp
        tn, n_pad = _choose_batch_tile(n, td, kp)
        grid = (n_pad // tn, d_pad // td)

        x = self._prep_x(image, n, n_pad)

        kernel = functools.partial(
            _vanilla_test_kernel,
            block_d=td, last_step=grid[1] - 1, w_resident=self._w_resident)

        logits_pad = pl.pallas_call(
            kernel,
            out_shape=jax.ShapeDtypeStruct((n_pad, kp), jnp.float32),
            grid_spec=pltpu.PrefetchScalarGridSpec(
                num_scalar_prefetch=0,
                grid=grid,
                in_specs=[
                    pl.BlockSpec((tn, td), lambda i, j: (i, j)),
                    self._w_spec(),
                    pl.BlockSpec((1, kp), lambda i, j: (0, 0)),
                ],
                out_specs=pl.BlockSpec((tn, kp), lambda i, j: (i, 0)),
            ),
            compiler_params=_COMPILER_PARAMS,
        )(x, self._w_t, self._b)
        return logits_pad[:n, :k]


if __name__ == "__main__":
    key = jax.random.PRNGKey(0)
    k_img, k_tgt, k_param = jax.random.split(key, 3)

    N, C, H, W = 2, 4, 16, 16
    NUM_CLASSES = 10
    D = C * H * W

    image = jax.random.normal(k_img, (N, C, H, W), jnp.float32)   # NCHW
    target = jax.random.randint(k_tgt, (N,), 0, NUM_CLASSES, jnp.int32)

    model = VanillaPallas(in_features=D, num_classes=NUM_CLASSES, key=k_param)

    # Training path: (logits, {'ce': loss})
    logits, losses = model.forward_train(image, target)
    logits = jax.block_until_ready(logits)
    ce = jax.block_until_ready(losses["ce"])

    # Eval path: logits only
    logits_eval = jax.block_until_ready(model.forward_test(image))

    # Reference in plain JAX at matching precision (bf16 operands, f32 accumulate),
    # same math as PyTorch F.cross_entropy with mean reduction.
    xb = image.reshape(N, -1).astype(jnp.bfloat16)
    wb = model.weight.astype(jnp.bfloat16).T
    ref_logits = jnp.dot(xb, wb, preferred_element_type=jnp.float32) + model.bias
    ref_ce = jnp.mean(
        jax.nn.logsumexp(ref_logits, axis=-1)
        - jnp.take_along_axis(ref_logits, target[:, None], axis=-1)[:, 0])

    assert logits.shape == (N, NUM_CLASSES)
    assert logits_eval.shape == (N, NUM_CLASSES)
    assert jnp.allclose(logits, ref_logits, atol=2e-3, rtol=2e-3)
    assert jnp.allclose(logits_eval, ref_logits, atol=2e-3, rtol=2e-3)
    assert jnp.allclose(ce, ref_ce, atol=2e-3, rtol=2e-3)

    print("KERNEL_OK")
</pallas_src>

<mosaic_0001>
module attributes {stable_mosaic.version = 11 : i64} {
  func.func @_vanilla_train_kernel(%arg0: i32, %arg1: i32, %arg2: memref<16x1024xf32, #tpu.memory_space<vmem>>, %arg3: memref<1024x128xbf16, #tpu.memory_space<vmem>>, %arg4: memref<1x128xf32, #tpu.memory_space<vmem>>, %arg5: memref<16x1xi32, #tpu.memory_space<vmem>>, %arg6: memref<16x128xf32, #tpu.memory_space<vmem>>, %arg7: memref<1x1x128xf32, #tpu.memory_space<vmem>>) attributes {dimension_semantics = [#tpu.dimension_semantics<parallel>, #tpu.dimension_semantics<arbitrary>], iteration_bounds = array<i64: 1, 1>, scalar_prefetch = 0 : i64, scratch_operands = 0 : i64, tpu.core_type = #tpu.core_type<tc>, window_params = [{transform_indices = @transform_0, window_bounds = array<i64: 16, 1024>}, {pipeline_mode = #tpu.pipeline_mode<synchronous>, transform_indices = @transform_1, window_bounds = array<i64: 1024, 128>}, {pipeline_mode = #tpu.pipeline_mode<synchronous>, transform_indices = @transform_2, window_bounds = array<i64: 1, 128>}, {transform_indices = @transform_3, window_bounds = array<i64: 16, 1>}, {transform_indices = @transform_4, window_bounds = array<i64: 16, 128>}, {transform_indices = @transform_5, window_bounds = array<i64: 1, 1, 128>}]} {
    %c16_i32 = arith.constant 16 : i32
    %0 = arith.muli %arg0, %c16_i32 : i32
    %c0_i32 = arith.constant 0 : i32
    %1 = arith.cmpi eq, %arg1, %c0_i32 : i32
    %2 = arith.extui %1 : i1 to i32
    %c0_i32_0 = arith.constant 0 : i32
    %3 = arith.cmpi ne, %2, %c0_i32_0 : i32
    scf.if %3 {
      %cst_9 = arith.constant 0.000000e+00 : f32
      %16 = vector.broadcast %cst_9 : f32 to vector<16x128xf32>
      %c0_10 = arith.constant 0 : index
      %c0_11 = arith.constant 0 : index
      %17 = vector.load %arg6[%c0_10, %c0_11] : memref<16x128xf32, #tpu.memory_space<vmem>>, vector<16x128xf32>
      tpu.vector_store %arg6[%c0_10, %c0_11], %16 {strides = array<i32>} : memref<16x128xf32, #tpu.memory_space<vmem>>, vector<16x128xf32>,
    } else {
    }
    %c0 = arith.constant 0 : index
    %c0_1 = arith.constant 0 : index
    %4 = vector.load %arg2[%c0, %c0_1] : memref<16x1024xf32, #tpu.memory_space<vmem>>, vector<16x1024xf32>
    %5 = arith.truncf %4 : vector<16x1024xf32> to vector<16x1024xbf16>
    %c1024_i32 = arith.constant 1024 : i32
    %6 = arith.muli %arg1, %c1024_i32 : i32
    %7 = arith.index_cast %6 : i32 to index
    %c0_2 = arith.constant 0 : index
    %8 = vector.load %arg3[%7, %c0_2] : memref<1024x128xbf16, #tpu.memory_space<vmem>>, vector<1024x128xbf16>
    %c0_3 = arith.constant 0 : index
    %c0_4 = arith.constant 0 : index
    %9 = vector.load %arg6[%c0_3, %c0_4] : memref<16x128xf32, #tpu.memory_space<vmem>>, vector<16x128xf32>
    %cst = arith.constant dense<0.000000e+00> : vector<16x128xf32>
    %10 = tpu.matmul %5, %8, %cst {dimension_numbers = #tpu.dot_dimension_numbers<[1], [0], [0], [1], [0, 0, 1, 1], [], []>} : vector<16x1024xbf16>, vector<1024x128xbf16>, vector<16x128xf32> -> vector<16x128xf32>
    %11 = arith.addf %9, %10 : vector<16x128xf32>
    %c0_5 = arith.constant 0 : index
    %c0_6 = arith.constant 0 : index
    %12 = vector.load %arg6[%c0_5, %c0_6] : memref<16x128xf32, #tpu.memory_space<vmem>>, vector<16x128xf32>
    tpu.vector_store %arg6[%c0_5, %c0_6], %11 {strides = array<i32>} : memref<16x128xf32, #tpu.memory_space<vmem>>, vector<16x128xf32>,
    %c0_i32_7 = arith.constant 0 : i32
    %13 = arith.cmpi eq, %arg1, %c0_i32_7 : i32
    %14 = arith.extui %13 : i1 to i32
    %c0_i32_8 = arith.constant 0 : i32
    %15 = arith.cmpi ne, %14, %c0_i32_8 : i32
    scf.if %15 {
      %c0_9 = arith.constant 0 : index
      %c0_10 = arith.constant 0 : index
      %16 = vector.load %arg6[%c0_9, %c0_10] : memref<16x128xf32, #tpu.memory_space<vmem>>, vector<16x128xf32>
      %c0_11 = arith.constant 0 : index
      %c0_12 = arith.constant 0 : index
      %17 = vector.load %arg4[%c0_11, %c0_12] : memref<1x128xf32, #tpu.memory_space<vmem>>, vector<1x128xf32>
      %18 = vector.broadcast %17 : vector<1x128xf32> to vector<16x128xf32>
      %19 = arith.addf %16, %18 : vector<16x128xf32>
      %c0_13 = arith.constant 0 : index
      %c0_14 = arith.constant 0 : index
      %20 = vector.load %arg6[%c0_13, %c0_14] : memref<16x128xf32, #tpu.memory_space<vmem>>, vector<16x128xf32>
      tpu.vector_store %arg6[%c0_13, %c0_14], %19 {strides = array<i32>} : memref<16x128xf32, #tpu.memory_space<vmem>>, vector<16x128xf32>,
      %21 = tpu.iota {dimensions = array<i32: 1>} : vector<16x128xi32>
      %c10_i32 = arith.constant 10 : i32
      %22 = vector.broadcast %c10_i32 : i32 to vector<16x128xi32>
      %23 = arith.cmpi slt, %21, %22 : vector<16x128xi32>
      %cst_15 = arith.constant -1.000000e+30 : f32
      %24 = vector.broadcast %cst_15 : f32 to vector<16x128xf32>
      %25 = arith.select %23, %19, %24 : vector<16x128xi1>, vector<16x128xf32>
      %cst_16 = arith.constant dense<0xFF800000> : vector<16xf32>
      %26 = vector.multi_reduction <maximumf>, %25, %cst_16 [1] : vector<16x128xf32> to vector<16xf32>
      %27 = vector.shape_cast %26 : vector<16xf32> to vector<16x1xf32>
      %28 = vector.broadcast %27 : vector<16x1xf32> to vector<16x128xf32>
      %29 = arith.subf %25, %28 : vector<16x128xf32>
      %30 = math.exp %29 : vector<16x128xf32>
      %cst_17 = arith.constant dense<0.000000e+00> : vector<16xf32>
      %31 = vector.multi_reduction <add>, %30, %cst_17 [1] : vector<16x128xf32> to vector<16xf32>
      %32 = vector.shape_cast %31 : vector<16xf32> to vector<16x1xf32>
      %33 = math.log %32 : vector<16x1xf32>
      %34 = arith.addf %27, %33 : vector<16x1xf32>
      %c0_18 = arith.constant 0 : index
      %c0_19 = arith.constant 0 : index
      %35 = vector.load %arg5[%c0_18, %c0_19] : memref<16x1xi32, #tpu.memory_space<vmem>>, vector<16x1xi32>
      %36 = vector.broadcast %35 : vector<16x1xi32> to vector<16x128xi32>
      %37 = arith.cmpi eq, %21, %36 : vector<16x128xi32>
      %38 = arith.andi %37, %23 : vector<16x128xi1>
      %cst_20 = arith.constant 0.000000e+00 : f32
      %39 = vector.broadcast %cst_20 : f32 to vector<16x128xf32>
      %40 = arith.select %38, %19, %39 : vector<16x128xi1>, vector<16x128xf32>
      %cst_21 = arith.constant dense<0.000000e+00> : vector<16xf32>
      %41 = vector.multi_reduction <add>, %40, %cst_21 [1] : vector<16x128xf32> to vector<16xf32>
      %42 = vector.shape_cast %41 : vector<16xf32> to vector<16x1xf32>
      %43 = tpu.iota {dimensions = array<i32: 0>} : vector<16x1xi32>
      %44 = vector.broadcast %0 : i32 to vector<16x1xi32>
      %45 = arith.addi %44, %43 : vector<16x1xi32>
      %c2_i32 = arith.constant 2 : i32
      %46 = vector.broadcast %c2_i32 : i32 to vector<16x1xi32>
      %47 = arith.cmpi slt, %45, %46 : vector<16x1xi32>
      %48 = arith.subf %34, %42 : vector<16x1xf32>
      %cst_22 = arith.constant 0.000000e+00 : f32
      %49 = vector.broadcast %cst_22 : f32 to vector<16x1xf32>
      %50 = arith.select %47, %48, %49 : vector<16x1xi1>, vector<16x1xf32>
      %51 = vector.shape_cast %50 : vector<16x1xf32> to vector<1x16x1xf32>
      %cst_23 = arith.constant dense<0.000000e+00> : vector<1xf32>
      %52 = vector.multi_reduction <add>, %51, %cst_23 [1, 2] : vector<1x16x1xf32> to vector<1xf32>
      %53 = vector.shape_cast %52 : vector<1xf32> to vector<1x1x1xf32>
      %54 = vector.extract %53[0, 0, 0] : f32 from vector<1x1x1xf32>
      %55 = vector.broadcast %54 : f32 to vector<1x1x128xf32>
      %c0_24 = arith.constant 0 : index
      %c0_25 = arith.constant 0 : index
      %c0_26 = arith.constant 0 : index
      %56 = vector.load %arg7[%c0_24, %c0_25, %c0_26] : memref<1x1x128xf32, #tpu.memory_space<vmem>>, vector<1x1x128xf32>
      tpu.vector_store %arg7[%c0_24, %c0_25, %c0_26], %55 {strides = array<i32>} : memref<1x1x128xf32, #tpu.memory_space<vmem>>, vector<1x1x128xf32>,
    } else {
    }
    return
  }
  func.func @transform_0(%arg0: i32, %arg1: i32) -> (i32, i32) {
    %c0_i32 = arith.constant 0 : i32
    return %arg0, %arg1 : i32, i32
  }
  func.func @transform_1(%arg0: i32, %arg1: i32) -> (i32, i32) {
    %c0_i32 = arith.constant 0 : i32
    %c0_i32_0 = arith.constant 0 : i32
    %c0_i32_1 = arith.constant 0 : i32
    return %c0_i32, %c0_i32_0 : i32, i32
  }
  func.func @transform_2(%arg0: i32, %arg1: i32) -> (i32, i32) {
    %c0_i32 = arith.constant 0 : i32
    %c0_i32_0 = arith.constant 0 : i32
    %c0_i32_1 = arith.constant 0 : i32
    return %c0_i32, %c0_i32_0 : i32, i32
  }
  func.func @transform_3(%arg0: i32, %arg1: i32) -> (i32, i32) {
    %c0_i32 = arith.constant 0 : i32
    %c0_i32_0 = arith.constant 0 : i32
    return %arg0, %c0_i32 : i32, i32
  }
  func.func @transform_4(%arg0: i32, %arg1: i32) -> (i32, i32) {
    %c0_i32 = arith.constant 0 : i32
    %c0_i32_0 = arith.constant 0 : i32
    return %arg0, %c0_i32 : i32, i32
  }
  func.func @transform_5(%arg0: i32, %arg1: i32) -> (i32, i32, i32) {
    %c0_i32 = arith.constant 0 : i32
    %c0_i32_0 = arith.constant 0 : i32
    %c0_i32_1 = arith.constant 0 : i32
    return %arg0, %c0_i32, %c0_i32_0 : i32, i32, i32
  }
}

</mosaic_0001>

<bundles_post_ra>
// kernel: forward_train.1
= control target key start
LH: loop header
LB: loop body
LE: loop exit
PB: predicated region body
PF: predicated region fallthrough
CT: control target
= control target key end

     0   :  { %11 = vsyncpa [#allocation3], 0  ;;  %s1102_s18 = smov [#allocation2]   ;;  %s1213_s0 = inlined_call_operand.vmem [shape: f32[16,1024], index: 0, kind: input, shape index: {}]   ;;  %s1214_s1 = inlined_call_operand.hbm [shape: bf16[1024,128], index: 1, kind: input, shape index: {}]   ;;  %s1215_s2 = inlined_call_operand.vmem [shape: f32[1,128], index: 2, kind: input, shape index: {}]   ;;  %s1216_s3 = inlined_call_operand.vmem [shape: s32[16,1], index: 3, kind: input, shape index: {}]   ;;  %s1217_s4 = inlined_call_operand.vmem [shape: f32[16,128], index: 4, kind: output, shape index: {0}]   ;;  %s1218_s5 = inlined_call_operand.vmem [shape: f32[1,1,128], index: 5, kind: output, shape index: {1}]  }
   0x1   :  { %s19_s19 = sshll.u32 %s1102_s18, 4  ;;  %s1078_s22 = scalar_lea.hbm %s1214_s1, 8192  ;;  %s20_s19 = int_to_ptr.vmem [resolvable:$true] %s19_s19 }
   0x2   :  { %p1079_p0 = scmp.ne.s32.totalorder %s1214_s1, %s1078_s22  ;;  %p1082_p1 = scmp.lt.u32.totalorder %s1078_s22, %s1214_s1 }
   0x4   :  { %p1084_p2 = pnand %p1082_p1, %p1079_p0 }
   0x6   :  { %1087 = shalt.err (!%p1084_p2)
}
   0x7   :  { %s1088_s27 = scalar_lea.vmem %s20_s19, 8192  ;;  %p1093_p4 = scmp.lt.s32.totalorder %s20_s19, %s20_s19 }
   0x8   :  { %p1089_p3 = scmp.ne.s32.totalorder %s20_s19, %s1088_s27  ;;  %p1094_p5 = scmp.lt.s32.totalorder %s1088_s27, %s1088_s27 }
   0xa   :  { %p1095_p6 = por %p1094_p5, %p1093_p4 }
   0xc   :  { %p1096_p7 = pnand %p1095_p6, %p1089_p3 }
   0xe   :  { %1099 = shalt.err (!%p1096_p7)
}
   0xf   :  { %s1103_s28 = smov 64   ;;  %s1104_s29 = smov 4  }
  0x10   :  { %25 = dma.hbm_to_vmem [thread:$0]  %s1214_s1, 8192, %s20_s19, [#allocation3], %s1103_s28, %s1103_s28, %s1104_s29  }
  0x11   :  { %1100 = dma.done.wait [#allocation3], 8192  }
  0x12   :  { %1101 = vsyncadd [#allocation3], 4294959104  ;;  %v1010_v0 = vld [vmem:[#allocation2 + $0x40] sm:$0xff]   ;;  %v1014_v4 = vld [vmem:[#allocation2 + $0x48] sm:$0xff]   ;;  %vm823_vm4 = vcmask 7168  }
  0x13   :  { %v1011_v1 = vld [vmem:[#allocation2 + $0xc0] sm:$0xff]   ;;  %914 = vmatprep.subr.bf16.mxu0 %v1010_v0  ;;  %v1015_v5 = vld [vmem:[#allocation2 + $0xc8] sm:$0xff]   ;;  %v1018_v8 = vld [vmem:[#allocation2 + $0x50] sm:$0xff]  }
  0x14   :  { %v1012_v2 = vld [vmem:[#allocation2] sm:$0xff]   ;;  %936 = vmatprep.subr.bf16.mxu1 %v1011_v1  ;;  %v1016_v6 = vld [vmem:[#allocation2 + $0x8] sm:$0xff]   ;;  %v1019_v9 = vld [vmem:[#allocation2 + $0xd0] sm:$0xff]  }
  0x15   :  { %v1013_v3 = vld [vmem:[#allocation2 + $0x80] sm:$0xff]   ;;  %915 = vmatpush3.bf16.msra.mxu0 %v1012_v2  ;;  %v1017_v7 = vld [vmem:[#allocation2 + $0x88] sm:$0xff]   ;;  %v1020_v10 = vld [vmem:[#allocation2 + $0x10] sm:$0xff]  }
  0x16   :  { %937 = vmatpush3.bf16.msra.mxu1 %v1013_v3  ;;  %916 = vmatprep.subr.bf16.mxu0 %v1014_v4  ;;  %v1021_v11 = vld [vmem:[#allocation2 + $0x90] sm:$0xff]   ;;  %v1022_v12 = vld [vmem:[#allocation2 + $0x58] sm:$0xff]   ;;  %v1026_v16 = vld [vmem:[#allocation2 + $0x60] sm:$0xff]  }
  0x17   :  { %938 = vmatprep.subr.bf16.mxu1 %v1015_v5  ;;  %v1023_v13 = vld [vmem:[#allocation2 + $0xd8] sm:$0xff]   ;;  %v1027_v17 = vld [vmem:[#allocation2 + $0xe0] sm:$0xff]   ;;  %v1030_v20 = vld [vmem:[#allocation2 + $0x68] sm:$0xff]  }
  0x18   :  { %v1024_v14 = vld [vmem:[#allocation2 + $0x18] sm:$0xff]   ;;  %v1028_v18 = vld [vmem:[#allocation2 + $0x20] sm:$0xff]   ;;  %v1031_v21 = vld [vmem:[#allocation2 + $0xe8] sm:$0xff]  }
  0x19   :  { %917 = vmatpush3.bf16.msra.mxu0 %v1016_v6  ;;  %v1025_v15 = vld [vmem:[#allocation2 + $0x98] sm:$0xff]   ;;  %v1029_v19 = vld [vmem:[#allocation2 + $0xa0] sm:$0xff]   ;;  %v1032_v22 = vld [vmem:[#allocation2 + $0x28] sm:$0xff]  }
  0x1a   :  { %939 = vmatpush3.bf16.msra.mxu1 %v1017_v7  ;;  %918 = vmatprep.subr.bf16.mxu0 %v1018_v8  ;;  %v1033_v23 = vld [vmem:[#allocation2 + $0xa8] sm:$0xff]   ;;  %v1034_v24 = vld [vmem:[#allocation2 + $0x70] sm:$0xff]   ;;  %v1038_v28 = vld [vmem:[#allocation2 + $0x78] sm:$0xff]  }
  0x1b   :  { %940 = vmatprep.subr.bf16.mxu1 %v1019_v9  ;;  %v1035_v25 = vld [vmem:[#allocation2 + $0xf0] sm:$0xff]   ;;  %v1039_v29 = vld [vmem:[#allocation2 + $0xf8] sm:$0xff]   ;;  %v42_v32 = vld [vmem:[%s1213_s0 + $0x8] sm:$0xff] }
  0x1c   :  { %v1036_v26 = vld [vmem:[#allocation2 + $0x30] sm:$0xff]   ;;  %v1040_v30 = vld [vmem:[#allocation2 + $0x38] sm:$0xff]   ;;  %v50_v33 = vld [vmem:[%s1213_s0 + $0x48] sm:$0xff] }
  0x1d   :  { %919 = vmatpush3.bf16.msra.mxu0 %v1020_v10  ;;  %v1037_v27 = vld [vmem:[#allocation2 + $0xb0] sm:$0xff]   ;;  %v1041_v31 = vld [vmem:[#allocation2 + $0xb8] sm:$0xff]   ;;  %v58_v35 = vpack.c.bf16 %v50_v33, %v42_v32  ;;  %v41_v37 = vld [vmem:[%s1213_s0] sm:$0xff] }
  0x1e   :  { %941 = vmatpush3.bf16.msra.mxu1 %v1021_v11  ;;  %920 = vmatprep.subr.bf16.mxu0 %v1022_v12  ;;  %v44_v34 = vld [vmem:[%s1213_s0 + $0x18] sm:$0xff]  ;;  %v49_v38 = vld [vmem:[%s1213_s0 + $0x40] sm:$0xff]  ;;  %v43_v41 = vld [vmem:[%s1213_s0 + $0x10] sm:$0xff] }
  0x1f   :  { %942 = vmatprep.subr.bf16.mxu1 %v1023_v13  ;;  %v52_v36 = vld [vmem:[%s1213_s0 + $0x58] sm:$0xff]  ;;  %v57_v40 = vpack.c.bf16 %v49_v38, %v41_v37  ;;  %v51_v42 = vld [vmem:[%s1213_s0 + $0x50] sm:$0xff]  ;;  %616 = vmatprep.mubr.bf16.mxu0 %v58_v35  ;;  %v1042_v44 = vld [vmem:[#allocation2 + $0x140] sm:$0xff]  }
  0x20   :  { %v60_v39 = vpack.c.bf16 %v52_v36, %v44_v34  ;;  %v59_v43 = vpack.c.bf16 %v51_v42, %v43_v41  ;;  %v1043_v45 = vld [vmem:[#allocation2 + $0x1c0] sm:$0xff]   ;;  %v1046_v48 = vld [vmem:[#allocation2 + $0x148] sm:$0xff]   ;;  %v1050_v52 = vld [vmem:[#allocation2 + $0x150] sm:$0xff]   ;;  %v768_v42 = vlaneseq }
  0x21   :  { %921 = vmatpush3.bf16.msra.mxu0 %v1024_v14  ;;  %v1044_v46 = vld [vmem:[#allocation2 + $0x100] sm:$0xff]   ;;  %v1047_v49 = vld [vmem:[#allocation2 + $0x1c8] sm:$0xff]   ;;  %v1051_v53 = vld [vmem:[#allocation2 + $0x1d0] sm:$0xff]  }
  0x22   :  { %943 = vmatpush3.bf16.msra.mxu1 %v1025_v15  ;;  %922 = vmatprep.subr.bf16.mxu0 %v1026_v16  ;;  %v1045_v47 = vld [vmem:[#allocation2 + $0x180] sm:$0xff]   ;;  %v1048_v50 = vld [vmem:[#allocation2 + $0x108] sm:$0xff]   ;;  %v1052_v54 = vld [vmem:[#allocation2 + $0x110] sm:$0xff]  }
  0x23   :  { %944 = vmatprep.subr.bf16.mxu1 %v1027_v17  ;;  %657 = vmatprep.mubr.bf16.mxu1 %v60_v39  ;;  %v1049_v51 = vld [vmem:[#allocation2 + $0x188] sm:$0xff]   ;;  %v1053_v55 = vld [vmem:[#allocation2 + $0x190] sm:$0xff]   ;;  %v1054_v56 = vld [vmem:[#allocation2 + $0x158] sm:$0xff]  }
  0x24   :  { %v1055_v57 = vld [vmem:[#allocation2 + $0x1d8] sm:$0xff]   ;;  %v1058_v60 = vld [vmem:[#allocation2 + $0x160] sm:$0xff]   ;;  %v1062_v0 = vld [vmem:[#allocation2 + $0x168] sm:$0xff]  }
  0x25   :  { %923 = vmatpush3.bf16.msra.mxu0 %v1028_v18  ;;  %v1056_v58 = vld [vmem:[#allocation2 + $0x118] sm:$0xff]   ;;  %v1059_v61 = vld [vmem:[#allocation2 + $0x1e0] sm:$0xff]   ;;  %v1063_v1 = vld [vmem:[#allocation2 + $0x1e8] sm:$0xff]  }
  0x26   :  { %945 = vmatpush3.bf16.msra.mxu1 %v1029_v19  ;;  %924 = vmatprep.subr.bf16.mxu0 %v1030_v20  ;;  %v1057_v59 = vld [vmem:[#allocation2 + $0x198] sm:$0xff]   ;;  %v1060_v62 = vld [vmem:[#allocation2 + $0x120] sm:$0xff]   ;;  %v1064_v2 = vld [vmem:[#allocation2 + $0x128] sm:$0xff]  }
  0x27   :  { %946 = vmatprep.subr.bf16.mxu1 %v1031_v21  ;;  %v1061_v63 = vld [vmem:[#allocation2 + $0x1a0] sm:$0xff]   ;;  %v1065_v3 = vld [vmem:[#allocation2 + $0x1a8] sm:$0xff]   ;;  %v1066_v4 = vld [vmem:[#allocation2 + $0x170] sm:$0xff]  }
  0x28   :  { %v1067_v5 = vld [vmem:[#allocation2 + $0x1f0] sm:$0xff]   ;;  %v1070_v8 = vld [vmem:[#allocation2 + $0x178] sm:$0xff]   ;;  %v46_v12 = vld [vmem:[%s1213_s0 + $0x28] sm:$0xff] }
  0x29   :  { %925 = vmatpush3.bf16.msra.mxu0 %v1032_v22  ;;  %v1068_v6 = vld [vmem:[#allocation2 + $0x130] sm:$0xff]   ;;  %v1071_v9 = vld [vmem:[#allocation2 + $0x1f8] sm:$0xff]   ;;  %v54_v13 = vld [vmem:[%s1213_s0 + $0x68] sm:$0xff] }
  0x2a   :  { %947 = vmatpush3.bf16.msra.mxu1 %v1033_v23  ;;  %926 = vmatprep.subr.bf16.mxu0 %v1034_v24  ;;  %v1069_v7 = vld [vmem:[#allocation2 + $0x1b0] sm:$0xff]   ;;  %v1072_v10 = vld [vmem:[#allocation2 + $0x138] sm:$0xff]   ;;  %v62_v16 = vpack.c.bf16 %v54_v13, %v46_v12  ;;  %v45_v18 = vld [vmem:[%s1213_s0 + $0x20] sm:$0xff]  ;;  %v1105_v24 = vmov 0  }
  0x2b   :  { %948 = vmatprep.subr.bf16.mxu1 %v1035_v25  ;;  %v1073_v11 = vld [vmem:[#allocation2 + $0x1b8] sm:$0xff]   ;;  %v53_v19 = vld [vmem:[%s1213_s0 + $0x60] sm:$0xff]  ;;  %v47_v20 = vld [vmem:[%s1213_s0 + $0x30] sm:$0xff]  ;;  %1009 = vset.pattern.permute.xlu0 %v1105_v24 }
  0x2c   :  { %v48_v14 = vld [vmem:[%s1213_s0 + $0x38] sm:$0xff]  ;;  %v61_v21 = vpack.c.bf16 %v53_v19, %v45_v18  ;;  %v55_v22 = vld [vmem:[%s1213_s0 + $0x70] sm:$0xff] }
  0x2d   :  { %927 = vmatpush3.bf16.msra.mxu0 %v1036_v26  ;;  %v56_v15 = vld [vmem:[%s1213_s0 + $0x78] sm:$0xff]  ;;  %v63_v23 = vpack.c.bf16 %v55_v22, %v47_v20 }
  0x2e   :  { %949 = vmatpush3.bf16.msra.mxu1 %v1037_v27  ;;  %928 = vmatprep.subr.bf16.mxu0 %v1038_v28  ;;  %v64_v17 = vpack.c.bf16 %v56_v15, %v48_v14 }
  0x2f   :  { %950 = vmatprep.subr.bf16.mxu1 %v1039_v29 }
  0x31   :  { %929 = vmatpush3.bf16.msra.mxu0 %v1040_v30 }
  0x32   :  { %951 = vmatpush3.bf16.msra.mxu1 %v1041_v31  ;;  %958 = vmatprep.subr.bf16.mxu0 %v1042_v44 }
  0x33   :  { %980 = vmatprep.subr.bf16.mxu1 %v1043_v45 }
  0x34   :  { %617 = vmatmul.mubr.bf16.vlgmr.msra.gmra.mrb[0].mxu0 %v57_v40 }
  0x35   :  { %658 = vmatmul.mubr.bf16.vlgmr.msra.gmra.mrb[0].mxu1 %v59_v43  ;;  %959 = vmatpush3.bf16.msra.mxu0 %v1044_v46 }
  0x36   :  { %981 = vmatpush3.bf16.msra.mxu1 %v1045_v47  ;;  %960 = vmatprep.subr.bf16.mxu0 %v1046_v48 }
  0x37   :  { %982 = vmatprep.subr.bf16.mxu1 %v1047_v49  ;;  %698 = vmatprep.mubr.bf16.mxu0 %v62_v16 }
  0x38   :  { %739 = vmatprep.mubr.bf16.mxu1 %v64_v17 }
  0x39   :  { %961 = vmatpush3.bf16.msra.mxu0 %v1048_v50 }
  0x3a   :  { %983 = vmatpush3.bf16.msra.mxu1 %v1049_v51  ;;  %962 = vmatprep.subr.bf16.mxu0 %v1050_v52 }
  0x3b   :  { %984 = vmatprep.subr.bf16.mxu1 %v1051_v53  ;;  %v769_v53 = vand.u32 127, %v768_v42 }
  0x3d   :  { %963 = vmatpush3.bf16.msra.mxu0 %v1052_v54  ;;  %vm770_vm0 = vcmp.lt.s32.totalorder %v769_v53, 10 }
  0x3e   :  { %985 = vmatpush3.bf16.msra.mxu1 %v1053_v55  ;;  %964 = vmatprep.subr.bf16.mxu0 %v1054_v56  ;;  %v913_v56 = vld [vmem:[%s1215_s2] ss:$0 sm:$0xff] }
  0x3f   :  { %986 = vmatprep.subr.bf16.mxu1 %v1055_v57 }
  0x41   :  { %965 = vmatpush3.bf16.msra.mxu0 %v1056_v58 }
  0x42   :  { %987 = vmatpush3.bf16.msra.mxu1 %v1057_v59  ;;  %966 = vmatprep.subr.bf16.mxu0 %v1058_v60 }
  0x43   :  { %988 = vmatprep.subr.bf16.mxu1 %v1059_v61  ;;  %v793_v61 = vld [vmem:[%s1216_s3] sm:$0xff] }
  0x45   :  { %967 = vmatpush3.bf16.msra.mxu0 %v1060_v62 }
  0x46   :  { %989 = vmatpush3.bf16.msra.mxu1 %v1061_v63  ;;  %968 = vmatprep.subr.bf16.mxu0 %v1062_v0 }
  0x47   :  { %990 = vmatprep.subr.bf16.mxu1 %v1063_v1 }
  0x49   :  { %969 = vmatpush3.bf16.msra.mxu0 %v1064_v2 }
  0x4a   :  { %991 = vmatpush3.bf16.msra.mxu1 %v1065_v3  ;;  %970 = vmatprep.subr.bf16.mxu0 %v1066_v4 }
  0x4b   :  { %992 = vmatprep.subr.bf16.mxu1 %v1067_v5 }
  0x4d   :  { %971 = vmatpush3.bf16.msra.mxu0 %v1068_v6  ;;  %v812_v6 = vshrl.u32 %v768_v42, 7 }
  0x4e   :  { %993 = vmatpush3.bf16.msra.mxu1 %v1069_v7  ;;  %972 = vmatprep.subr.bf16.mxu0 %v1070_v8 }
  0x4f   :  { %994 = vmatprep.subr.bf16.mxu1 %v1071_v9  ;;  %vm817_vm3 = vcmp.lt.s32.totalorder %v812_v6, 2 }
  0x51   :  { %973 = vmatpush3.bf16.msra.mxu0 %v1072_v10 }
  0x52   :  { %995 = vmatpush3.bf16.msra.mxu1 %v1073_v11 }
  0x54   :  { %699 = vmatmul.mubr.bf16.vlgmr.msra.gmra.mrb[4].mxu0 %v61_v21 }
  0x55   :  { %740 = vmatmul.mubr.bf16.vlgmr.msra.gmra.mrb[4].mxu1 %v63_v23 }
 0x107   :  { %v930_v25 = vpop.f32.mrb[0].mxu0 }
 0x108   :  { %v952_v26 = vpop.f32.mrb[0].mxu1  ;;  %v931_v27 = vpop.f32.mrb[1].mxu0 }
 0x109   :  { %v932_v28 = vadd.f32 %v931_v27, %v930_v25  ;;  %v953_v29 = vpop.f32.mrb[1].mxu1  ;;  %v933_v30 = vpop.f32.mrb[2].mxu0 }
 0x10a   :  { %v954_v31 = vadd.f32 %v953_v29, %v952_v26  ;;  %v955_v32 = vpop.f32.mrb[2].mxu1  ;;  %v934_v33 = vpop.f32.mrb[3].mxu0 }
 0x10b   :  { %v935_v34 = vadd.f32 %v934_v33, %v933_v30  ;;  %v956_v35 = vpop.f32.mrb[3].mxu1 }
 0x10c   :  { %v660_v36 = vadd.f32 %v954_v31, %v932_v28  ;;  %v957_v37 = vadd.f32 %v956_v35, %v955_v32 }
 0x10e   :  { %v663_v38 = vadd.f32 %v957_v37, %v935_v34 }
 0x127   :  { %v974_v39 = vpop.f32.mrb[4].mxu0 }
 0x128   :  { %v996_v40 = vpop.f32.mrb[4].mxu1  ;;  %v975_v41 = vpop.f32.mrb[5].mxu0 }
 0x129   :  { %v976_v43 = vadd.f32 %v975_v41, %v974_v39  ;;  %v997_v44 = vpop.f32.mrb[5].mxu1  ;;  %v977_v45 = vpop.f32.mrb[6].mxu0 }
 0x12a   :  { %v998_v46 = vadd.f32 %v997_v44, %v996_v40  ;;  %v999_v47 = vpop.f32.mrb[6].mxu1  ;;  %v978_v48 = vpop.f32.mrb[7].mxu0 }
 0x12b   :  { %v701_v49 = vadd.f32 %v976_v43, %v660_v36  ;;  %v979_v50 = vadd.f32 %v978_v48, %v977_v45  ;;  %v1000_v51 = vpop.f32.mrb[7].mxu1 }
 0x12c   :  { %v1001_v52 = vadd.f32 %v1000_v51, %v999_v47 }
 0x12d   :  { %v742_v54 = vadd.f32 %v998_v46, %v701_v49  ;;  %v704_v55 = vadd.f32 %v979_v50, %v663_v38 }
 0x12f   :  { %v745_v57 = vadd.f32 %v1001_v52, %v704_v55  ;;  %v764_v58 = vadd.f32 %v913_v56, %v742_v54 }
 0x131   :  { %v765_v59 = vadd.f32 %v913_v56, %v745_v57  ;;  %v771_v60 = vsel %vm770_vm0, %v764_v58, -1e+30  ;;  %766 = vst [vmem:[%s1217_s4] sm:$0xff] %v764_v58 }
 0x132   :  { %773 = vmax.xlane.f32.xlu0 %v771_v60 }
 0x133   :  { %767 = vst [vmem:[%s1217_s4 + $0x8] sm:$0xff] %v765_v59 }
 0x148   :  { %796 = vperm.xlu0 %1009, %v793_v61  }
 0x1bf   :  { %v774_v62 = vpop.xlane.xlu0 %773 }
 0x1c0   :  { %v777_v63 = vsub.f32 %v771_v60, %v774_v62 }
 0x1c2   :  { %v779_v0 = vmul.f32 1.442695, %v777_v63 }
 0x1c4   :  { %1074 = vpow2.f32 %v779_v0 }
 0x1c7   :  { %v797_v1 = vpop.permute.xlu0 %796 }
 0x1c8   :  { %vm801_vm1 = vcmp.eq.s32.totalorder %v769_v53, %v797_v1 }
 0x1c9   :  { %vm803_vm2 = vmand %vm801_vm1, %vm770_vm0 }
 0x1ca   :  { %v805_v3 = vsel %vm803_vm2, %v764_v58, 0.0 }
 0x1ce   :  { %v1075_v2 = vpop.eup %1074 }
 0x1cf   :  { %783 = vadd.xlane.f32.xlu1 %v1075_v2 }
 0x1d3   :  { %807 = vadd.xlane.f32.xlu1 %v805_v3 }
 0x25c   :  { %v784_v4 = vpop.xlane.xlu1 %783 }
 0x25d   :  { %1076 = vlog2.f32 %v784_v4 }
 0x260   :  { %v808_v9 = vpop.xlane.xlu1 %807 }
 0x267   :  { %v1077_v5 = vpop.eup %1076 }
 0x268   :  { %v788_v7 = vmul.f32 0.6931472, %v1077_v5 }
 0x26a   :  { %v791_v8 = vadd.f32 %v788_v7, %v774_v62 }
 0x26c   :  { %v819_v10 = vsub.f32 %v791_v8, %v808_v9 }
 0x26e   :  { %v821_v11 = vsel %vm817_vm3, %v819_v10, 0.0 }
 0x26f   :  { %v824_v12 = vsel %vm823_vm4, %v821_v11, 0.0 }
 0x270   :  { %827 = vadd.xlane.f32.xlu1 %v824_v12 }
 0x2fd   :  { %v828_v13 = vpop.xlane.xlu1 %827 }
 0x2fe   :  { %v829_v14 = vrot.slane %v828_v13, 4 }
 0x300   :  { %v830_v15 = vadd.f32 %v829_v14, %v828_v13 }
 0x302   :  { %v831_v16 = vrot.slane %v830_v15, 2 }
 0x304   :  { %v832_v17 = vadd.f32 %v831_v16, %v830_v15 }
 0x306   :  { %v833_v18 = vrot.slane %v832_v17, 1 }
 0x308   :  { %v834_v19 = vadd.f32 %v833_v18, %v832_v17 }
 0x30a   :  { %1002 = vpush %v834_v19 }
 0x33b   :  { %s1003_s2 = spop %1002 }
 0x33c   :  { %v836_v20 = vstv %s1003_s2 }
 0x33d   :  { %837 = vst [vmem:[%s1218_s5] sm:$0x1] %v836_v20 }
 0x33e   :  { %846 = vsyncpa [#allocation3], 1 }

</bundles_post_ra>
